<compile_context>
chip_gen: v7x
topology: tpu7x:2x2x1
jax: 0.10.0
libtpu: 0.0.40
codegen_flags: <defaults>
</compile_context>

<pallas_src>
import functools

import jax
import jax.numpy as jnp
from jax.experimental import pallas as pl
from jax.experimental.pallas import tpu as pltpu


def _round_up(n, m):
    return (n + m - 1) // m * m


def _mlp_batchavg_kernel(x_ref, w1_ref, b1_ref, w2_ref, b2_ref,
                         softmax_ref, psum_ref, *, tm, b_true):
    # x tile: (TM, IN_pad). Weights resident: (IN_pad, HID_pad), (HID_pad, OUT_pad).
    x = x_ref[...]

    # Hidden layer: Linear + ReLU. MXU consumes native dtype, accumulates in f32.
    h = jnp.dot(x, w1_ref[...], preferred_element_type=jnp.float32) + b1_ref[...]
    h = jnp.maximum(h, 0.0)

    # Output layer. Padded output columns have zero W2 columns and a -1e30 bias,
    # so exp() on them is exactly 0 and they vanish from the softmax.
    logits = (jnp.dot(h, w2_ref[...], preferred_element_type=jnp.float32)
              + b2_ref[...])

    # Numerically-stable softmax over the feature (lane) axis.
    m = jnp.max(logits, axis=1, keepdims=True)
    e = jnp.exp(logits - m)
    denom = jnp.sum(e, axis=1, keepdims=True)
    # EUP approximate reciprocal + one cheap Newton step on a (TM, 1) vector.
    r = pl.reciprocal(denom, approx=True)
    r = r * (2.0 - denom * r)
    s = e * r

    softmax_ref[...] = s.astype(softmax_ref.dtype)

    # Per-tile partial sum over valid (non-padded) batch rows; the wrapper
    # finishes the mean. Keeping this per-tile keeps the batch axis "parallel".
    row = (pl.program_id(0) * tm
           + jax.lax.broadcasted_iota(jnp.int32, (tm, 1), 0))
    valid = (row < b_true).astype(jnp.float32)
    psum_ref[...] = jnp.sum(s * valid, axis=0, keepdims=True)


def mlp_batch_avg(x, w1, b1, w2, b2, *, tm=None):
    """x: (B, in); w1: (in, hidden); b1: (hidden,); w2: (hidden, out); b2: (out,).

    Weights are already stored transposed vs. PyTorch ((in, out) layout).
    Returns (batch_avg (out,), softmax (B, out)) like MLPBatchAvg.forward.
    """
    B, in_f = x.shape
    hidden = w1.shape[1]
    out_f = w2.shape[1]

    LANE = 128
    in_p = _round_up(in_f, LANE)
    hid_p = _round_up(hidden, LANE)
    out_p = _round_up(out_f, LANE)

    # Batch tile: largest multiple of 8 up to 512. With 128-wide f32 features a
    # double-buffered (512, 128) tile is only ~0.5 MiB, well inside even v7x's
    # 64 MiB VMEM, so no vmem_limit override is needed.
    if tm is None:
        tm = min(512, _round_up(B, 8))
    b_p = _round_up(B, tm)
    n_tiles = b_p // tm

    # Zero padding keeps Linear/ReLU semantics exactly; padded output logits get
    # a huge negative bias so softmax over padded lanes is exactly 0.
    x_p = jnp.pad(x, ((0, b_p - B), (0, in_p - in_f)))
    w1_p = jnp.pad(w1, ((0, in_p - in_f), (0, hid_p - hidden)))
    b1_p = jnp.pad(b1.reshape(1, hidden).astype(jnp.float32),
                   ((0, 0), (0, hid_p - hidden)))
    w2_p = jnp.pad(w2, ((0, hid_p - hidden), (0, out_p - out_f)))
    b2_p = jnp.pad(b2.reshape(1, out_f).astype(jnp.float32),
                   ((0, 0), (0, out_p - out_f)), constant_values=-1e30)

    kernel = functools.partial(_mlp_batchavg_kernel, tm=tm, b_true=B)

    softmax_p, psum = pl.pallas_call(
        kernel,
        out_shape=(
            jax.ShapeDtypeStruct((b_p, out_p), x.dtype),
            jax.ShapeDtypeStruct((n_tiles, out_p), jnp.float32),
        ),
        grid=(n_tiles,),
        in_specs=[
            pl.BlockSpec((tm, in_p), lambda i: (i, 0)),      # x: tiled over batch
            pl.BlockSpec((in_p, hid_p), lambda i: (0, 0)),   # W1 resident
            pl.BlockSpec((1, hid_p), lambda i: (0, 0)),      # b1 resident
            pl.BlockSpec((hid_p, out_p), lambda i: (0, 0)),  # W2 resident
            pl.BlockSpec((1, out_p), lambda i: (0, 0)),      # b2 resident
        ],
        out_specs=(
            pl.BlockSpec((tm, out_p), lambda i: (i, 0)),     # softmax tile
            pl.BlockSpec((1, out_p), lambda i: (i, 0)),      # per-tile partial sum
        ),
        compiler_params=pltpu.CompilerParams(
            dimension_semantics=("parallel",)),
    )(x_p, w1_p, b1_p, w2_p, b2_p)

    softmax = softmax_p[:B, :out_f]
    batch_avg = (jnp.sum(psum, axis=0)[:out_f] / B).astype(x.dtype)
    return batch_avg, softmax


def _reference(x, w1, b1, w2, b2):
    h = jnp.maximum(x @ w1 + b1, 0.0)
    logits = h @ w2 + b2
    s = jax.nn.softmax(logits, axis=1)
    return jnp.mean(s, axis=0), s


if __name__ == "__main__":
    # Shapes consistent with MLPBatchAvg(in_features=32, out_features=10),
    # default hidden_layer_sizes=(100,).
    B, IN, HIDDEN, OUT = 8, 32, 100, 10

    key = jax.random.PRNGKey(0)
    kx, kw1, kb1, kw2, kb2 = jax.random.split(key, 5)

    x = jax.random.normal(kx, (B, IN), dtype=jnp.float32)

    # Deterministic init, roughly nn.Linear's default scale; weights stored
    # directly in (in, out) layout (transposed vs. PyTorch's (out, in)).
    lim1 = 1.0 / (IN ** 0.5)
    w1 = jax.random.uniform(kw1, (IN, HIDDEN), jnp.float32, -lim1, lim1)
    b1 = jax.random.uniform(kb1, (HIDDEN,), jnp.float32, -lim1, lim1)
    lim2 = 1.0 / (HIDDEN ** 0.5)
    w2 = jax.random.uniform(kw2, (HIDDEN, OUT), jnp.float32, -lim2, lim2)
    b2 = jax.random.uniform(kb2, (OUT,), jnp.float32, -lim2, lim2)

    batch_avg, softmax = jax.jit(mlp_batch_avg)(x, w1, b1, w2, b2)
    batch_avg = jax.block_until_ready(batch_avg)
    softmax = jax.block_until_ready(softmax)

    ref_avg, ref_softmax = _reference(x, w1, b1, w2, b2)
    assert batch_avg.shape == (OUT,)
    assert softmax.shape == (B, OUT)
    # Tolerance accounts for the EUP approx-reciprocal (+Newton) softmax denom.
    assert jnp.allclose(softmax, ref_softmax, atol=1e-4, rtol=1e-4)
    assert jnp.allclose(batch_avg, ref_avg, atol=1e-4, rtol=1e-4)

    print("KERNEL_OK")
</pallas_src>

<mosaic_0001>
module attributes {stable_mosaic.version = 11 : i64} {
  func.func @_mlp_batchavg_kernel(%arg0: i32, %arg1: memref<8x128xf32, #tpu.memory_space<vmem>>, %arg2: memref<128x128xf32, #tpu.memory_space<vmem>>, %arg3: memref<1x128xf32, #tpu.memory_space<vmem>>, %arg4: memref<128x128xf32, #tpu.memory_space<vmem>>, %arg5: memref<1x128xf32, #tpu.memory_space<vmem>>, %arg6: memref<8x128xf32, #tpu.memory_space<vmem>>, %arg7: memref<1x128xf32, #tpu.memory_space<vmem>>) attributes {dimension_semantics = [#tpu.dimension_semantics<parallel>], iteration_bounds = array<i64: 1>, scalar_prefetch = 0 : i64, scratch_operands = 0 : i64, tpu.core_type = #tpu.core_type<tc>, window_params = [{transform_indices = @transform_0, window_bounds = array<i64: 8, 128>}, {pipeline_mode = #tpu.pipeline_mode<synchronous>, transform_indices = @transform_1, window_bounds = array<i64: 128, 128>}, {pipeline_mode = #tpu.pipeline_mode<synchronous>, transform_indices = @transform_2, window_bounds = array<i64: 1, 128>}, {pipeline_mode = #tpu.pipeline_mode<synchronous>, transform_indices = @transform_3, window_bounds = array<i64: 128, 128>}, {pipeline_mode = #tpu.pipeline_mode<synchronous>, transform_indices = @transform_4, window_bounds = array<i64: 1, 128>}, {transform_indices = @transform_5, window_bounds = array<i64: 8, 128>}, {transform_indices = @transform_6, window_bounds = array<i64: 1, 128>}]} {
    %c0 = arith.constant 0 : index
    %c0_0 = arith.constant 0 : index
    %0 = vector.load %arg1[%c0, %c0_0] : memref<8x128xf32, #tpu.memory_space<vmem>>, vector<8x128xf32>
    %c0_1 = arith.constant 0 : index
    %c0_2 = arith.constant 0 : index
    %1 = vector.load %arg2[%c0_1, %c0_2] : memref<128x128xf32, #tpu.memory_space<vmem>>, vector<128x128xf32>
    %cst = arith.constant dense<0.000000e+00> : vector<8x128xf32>
    %2 = tpu.matmul %0, %1, %cst {dimension_numbers = #tpu.dot_dimension_numbers<[1], [0], [0], [1], [0, 0, 1, 1], [], []>} : vector<8x128xf32>, vector<128x128xf32>, vector<8x128xf32> -> vector<8x128xf32>
    %c0_3 = arith.constant 0 : index
    %c0_4 = arith.constant 0 : index
    %3 = vector.load %arg3[%c0_3, %c0_4] : memref<1x128xf32, #tpu.memory_space<vmem>>, vector<1x128xf32>
    %4 = vector.broadcast %3 : vector<1x128xf32> to vector<8x128xf32>
    %5 = arith.addf %2, %4 : vector<8x128xf32>
    %cst_5 = arith.constant 0.000000e+00 : f32
    %6 = vector.broadcast %cst_5 : f32 to vector<8x128xf32>
    %7 = arith.maximumf %5, %6 : vector<8x128xf32>
    %c0_6 = arith.constant 0 : index
    %c0_7 = arith.constant 0 : index
    %8 = vector.load %arg4[%c0_6, %c0_7] : memref<128x128xf32, #tpu.memory_space<vmem>>, vector<128x128xf32>
    %cst_8 = arith.constant dense<0.000000e+00> : vector<8x128xf32>
    %9 = tpu.matmul %7, %8, %cst_8 {dimension_numbers = #tpu.dot_dimension_numbers<[1], [0], [0], [1], [0, 0, 1, 1], [], []>} : vector<8x128xf32>, vector<128x128xf32>, vector<8x128xf32> -> vector<8x128xf32>
    %c0_9 = arith.constant 0 : index
    %c0_10 = arith.constant 0 : index
    %10 = vector.load %arg5[%c0_9, %c0_10] : memref<1x128xf32, #tpu.memory_space<vmem>>, vector<1x128xf32>
    %11 = vector.broadcast %10 : vector<1x128xf32> to vector<8x128xf32>
    %12 = arith.addf %9, %11 : vector<8x128xf32>
    %cst_11 = arith.constant dense<0xFF800000> : vector<8xf32>
    %13 = vector.multi_reduction <maximumf>, %12, %cst_11 [1] : vector<8x128xf32> to vector<8xf32>
    %14 = vector.shape_cast %13 : vector<8xf32> to vector<8x1xf32>
    %15 = vector.broadcast %14 : vector<8x1xf32> to vector<8x128xf32>
    %16 = arith.subf %12, %15 : vector<8x128xf32>
    %17 = math.exp %16 : vector<8x128xf32>
    %cst_12 = arith.constant dense<0.000000e+00> : vector<8xf32>
    %18 = vector.multi_reduction <add>, %17, %cst_12 [1] : vector<8x128xf32> to vector<8xf32>
    %19 = vector.shape_cast %18 : vector<8xf32> to vector<8x1xf32>
    %20 = tpu.reciprocal %19 {approx = true} : vector<8x1xf32> -> vector<8x1xf32>
    %21 = arith.mulf %19, %20 : vector<8x1xf32>
    %cst_13 = arith.constant 2.000000e+00 : f32
    %22 = vector.broadcast %cst_13 : f32 to vector<8x1xf32>
    %23 = arith.subf %22, %21 : vector<8x1xf32>
    %24 = arith.mulf %20, %23 : vector<8x1xf32>
    %25 = vector.broadcast %24 : vector<8x1xf32> to vector<8x128xf32>
    %26 = arith.mulf %17, %25 : vector<8x128xf32>
    %c0_14 = arith.constant 0 : index
    %c0_15 = arith.constant 0 : index
    %27 = vector.load %arg6[%c0_14, %c0_15] : memref<8x128xf32, #tpu.memory_space<vmem>>, vector<8x128xf32>
    tpu.vector_store %arg6[%c0_14, %c0_15], %26 {strides = array<i32>} : memref<8x128xf32, #tpu.memory_space<vmem>>, vector<8x128xf32>,
    %c8_i32 = arith.constant 8 : i32
    %28 = arith.muli %arg0, %c8_i32 : i32
    %29 = tpu.iota {dimensions = array<i32: 0>} : vector<8x1xi32>
    %30 = vector.broadcast %28 : i32 to vector<8x1xi32>
    %31 = arith.addi %30, %29 : vector<8x1xi32>
    %c8_i32_16 = arith.constant 8 : i32
    %32 = vector.broadcast %c8_i32_16 : i32 to vector<8x1xi32>
    %33 = arith.cmpi slt, %31, %32 : vector<8x1xi32>
    %34 = arith.extui %33 : vector<8x1xi1> to vector<8x1xi32>
    %35 = arith.sitofp %34 : vector<8x1xi32> to vector<8x1xf32>
    %36 = vector.broadcast %35 : vector<8x1xf32> to vector<8x128xf32>
    %37 = arith.mulf %26, %36 : vector<8x128xf32>
    %cst_17 = arith.constant dense<0.000000e+00> : vector<128xf32>
    %38 = vector.multi_reduction <add>, %37, %cst_17 [0] : vector<8x128xf32> to vector<128xf32>
    %39 = vector.shape_cast %38 : vector<128xf32> to vector<1x128xf32>
    %c0_18 = arith.constant 0 : index
    %c0_19 = arith.constant 0 : index
    %40 = vector.load %arg7[%c0_18, %c0_19] : memref<1x128xf32, #tpu.memory_space<vmem>>, vector<1x128xf32>
    tpu.vector_store %arg7[%c0_18, %c0_19], %39 {strides = array<i32>} : memref<1x128xf32, #tpu.memory_space<vmem>>, vector<1x128xf32>,
    return
  }
  func.func @transform_0(%arg0: i32) -> (i32, i32) {
    %c0_i32 = arith.constant 0 : i32
    %c0_i32_0 = arith.constant 0 : i32
    return %arg0, %c0_i32 : i32, i32
  }
  func.func @transform_1(%arg0: i32) -> (i32, i32) {
    %c0_i32 = arith.constant 0 : i32
    %c0_i32_0 = arith.constant 0 : i32
    %c0_i32_1 = arith.constant 0 : i32
    return %c0_i32, %c0_i32_0 : i32, i32
  }
  func.func @transform_2(%arg0: i32) -> (i32, i32) {
    %c0_i32 = arith.constant 0 : i32
    %c0_i32_0 = arith.constant 0 : i32
    %c0_i32_1 = arith.constant 0 : i32
    return %c0_i32, %c0_i32_0 : i32, i32
  }
  func.func @transform_3(%arg0: i32) -> (i32, i32) {
    %c0_i32 = arith.constant 0 : i32
    %c0_i32_0 = arith.constant 0 : i32
    %c0_i32_1 = arith.constant 0 : i32
    return %c0_i32, %c0_i32_0 : i32, i32
  }
  func.func @transform_4(%arg0: i32) -> (i32, i32) {
    %c0_i32 = arith.constant 0 : i32
    %c0_i32_0 = arith.constant 0 : i32
    %c0_i32_1 = arith.constant 0 : i32
    return %c0_i32, %c0_i32_0 : i32, i32
  }
  func.func @transform_5(%arg0: i32) -> (i32, i32) {
    %c0_i32 = arith.constant 0 : i32
    %c0_i32_0 = arith.constant 0 : i32
    return %arg0, %c0_i32 : i32, i32
  }
  func.func @transform_6(%arg0: i32) -> (i32, i32) {
    %c0_i32 = arith.constant 0 : i32
    %c0_i32_0 = arith.constant 0 : i32
    return %arg0, %c0_i32 : i32, i32
  }
}

</mosaic_0001>

<bundles_post_ra>
// kernel: mlp_batch_avg.1
= control target key start
LH: loop header
LB: loop body
LE: loop exit
PB: predicated region body
PF: predicated region fallthrough
CT: control target
= control target key end

     0   :  { %v444_v3 = vmov 0.0|0.0   ;;  %vm445_vm0 = vmmov 0   ;;  %v446_v6 = vmov 0.0   ;;  %s619_s0 = inlined_call_operand.vmem [shape: f32[8,128], index: 0, kind: input, shape index: {}]   ;;  %s620_s1 = inlined_call_operand.vmem [shape: f32[128,128], index: 1, kind: input, shape index: {}]   ;;  %s621_s2 = inlined_call_operand.vmem [shape: f32[1,128], index: 2, kind: input, shape index: {}]   ;;  %s622_s3 = inlined_call_operand.vmem [shape: f32[128,128], index: 3, kind: input, shape index: {}]   ;;  %s623_s4 = inlined_call_operand.vmem [shape: f32[1,128], index: 4, kind: input, shape index: {}]   ;;  %s624_s5 = inlined_call_operand.hbm [shape: f32[8,128], index: 5, kind: output, shape index: {0}]   ;;  %s625_s6 = inlined_call_operand.vmem [shape: f32[1,128], index: 6, kind: output, shape index: {1}]  }
   0x1   :  { %v24_v0 = vld [vmem:[%s620_s1] sm:$0xff]  ;;  %v25_v1 = vld [vmem:[%s620_s1 + $0x8] sm:$0xff]  ;;  %v26_v2 = vld [vmem:[%s620_s1 + $0x10] sm:$0xff]  ;;  %364 = vmatprep.subr.bf16.mxu0 %v444_v3  ;;  %326 = vmatprep.mubr.msk.f32.mxu0 %vm445_vm0, %v446_v6 }
   0x2   :  { %v365_v4 = vpack.c.bf16 %v25_v1, %v24_v0  ;;  %v27_v5 = vld [vmem:[%s620_s1 + $0x18] sm:$0xff]  ;;  %388 = vmatprep.subr.bf16.mxu1 %v444_v3  ;;  %361 = vmatprep.mubr.msk.f32.mxu1 %vm445_vm0, %v446_v6  ;;  %v28_v8 = vld [vmem:[%s620_s1 + $0x20] sm:$0xff]  ;;  %v29_v9 = vld [vmem:[%s620_s1 + $0x28] sm:$0xff] }
   0x3   :  { %v368_v7 = vpack.c.bf16 %v27_v5, %v26_v2  ;;  %v118_v10 = vld [vmem:[%s622_s3] sm:$0xff]  ;;  %v119_v11 = vld [vmem:[%s622_s3 + $0x8] sm:$0xff]  ;;  %v120_v12 = vld [vmem:[%s622_s3 + $0x10] sm:$0xff]  ;;  %v371_v14 = vpack.c.bf16 %v29_v9, %v28_v8 }
   0x4   :  { %366 = vmatpush3.bf16.msra.mxu0 %v365_v4  ;;  %v121_v13 = vld [vmem:[%s622_s3 + $0x18] sm:$0xff]  ;;  %v389_v15 = vpack.c.bf16 %v119_v11, %v118_v10  ;;  %v30_v16 = vld [vmem:[%s620_s1 + $0x30] sm:$0xff]  ;;  %v122_v19 = vld [vmem:[%s622_s3 + $0x20] sm:$0xff] }
   0x5   :  { %367 = vmatprep.subr.bf16.mxu0 %v444_v3  ;;  %v31_v17 = vld [vmem:[%s620_s1 + $0x38] sm:$0xff]  ;;  %v392_v18 = vpack.c.bf16 %v121_v13, %v120_v12  ;;  %v123_v20 = vld [vmem:[%s622_s3 + $0x28] sm:$0xff] }
   0x6   :  { %390 = vmatpush3.bf16.msra.mxu1 %v389_v15 }
   0x7   :  { %391 = vmatprep.subr.bf16.mxu1 %v444_v3 }
   0x8   :  { %369 = vmatpush3.bf16.msra.mxu0 %v368_v7 }
   0x9   :  { %370 = vmatprep.subr.bf16.mxu0 %v444_v3 }
   0xa   :  { %12 = vsyncpa [#allocation3], 0  ;;  %v374_v21 = vpack.c.bf16 %v31_v17, %v30_v16  ;;  %v32_v22 = vld [vmem:[%s620_s1 + $0x40] sm:$0xff]  ;;  %v33_v23 = vld [vmem:[%s620_s1 + $0x48] sm:$0xff]  ;;  %393 = vmatpush3.bf16.msra.mxu1 %v392_v18  ;;  %v395_v24 = vpack.c.bf16 %v123_v20, %v122_v19 }
   0xb   :  { %394 = vmatprep.subr.bf16.mxu1 %v444_v3  ;;  %v124_v25 = vld [vmem:[%s622_s3 + $0x30] sm:$0xff]  ;;  %v125_v26 = vld [vmem:[%s622_s3 + $0x38] sm:$0xff]  ;;  %v377_v27 = vpack.c.bf16 %v33_v23, %v32_v22  ;;  %v126_v31 = vld [vmem:[%s622_s3 + $0x40] sm:$0xff] }
   0xc   :  { %372 = vmatpush3.bf16.msra.mxu0 %v371_v14  ;;  %v34_v28 = vld [vmem:[%s620_s1 + $0x50] sm:$0xff]  ;;  %v35_v29 = vld [vmem:[%s620_s1 + $0x58] sm:$0xff]  ;;  %v398_v30 = vpack.c.bf16 %v125_v26, %v124_v25  ;;  %v127_v32 = vld [vmem:[%s622_s3 + $0x48] sm:$0xff] }
   0xd   :  { %373 = vmatprep.subr.bf16.mxu0 %v444_v3  ;;  %v380_v33 = vpack.c.bf16 %v35_v29, %v34_v28  ;;  %v36_v34 = vld [vmem:[%s620_s1 + $0x60] sm:$0xff]  ;;  %v37_v35 = vld [vmem:[%s620_s1 + $0x68] sm:$0xff]  ;;  %v401_v36 = vpack.c.bf16 %v127_v32, %v126_v31  ;;  %v128_v37 = vld [vmem:[%s622_s3 + $0x50] sm:$0xff] }
   0xe   :  { %396 = vmatpush3.bf16.msra.mxu1 %v395_v24  ;;  %v129_v38 = vld [vmem:[%s622_s3 + $0x58] sm:$0xff]  ;;  %v383_v39 = vpack.c.bf16 %v37_v35, %v36_v34  ;;  %v38_v40 = vld [vmem:[%s620_s1 + $0x70] sm:$0xff]  ;;  %v130_v43 = vld [vmem:[%s622_s3 + $0x60] sm:$0xff] }
   0xf   :  { %397 = vmatprep.subr.bf16.mxu1 %v444_v3  ;;  %v39_v41 = vld [vmem:[%s620_s1 + $0x78] sm:$0xff]  ;;  %v404_v42 = vpack.c.bf16 %v129_v38, %v128_v37  ;;  %v131_v44 = vld [vmem:[%s622_s3 + $0x68] sm:$0xff]  ;;  %v23_v47 = vld [vmem:[%s619_s0] sm:$0xff] }
  0x10   :  { %375 = vmatpush3.bf16.msra.mxu0 %v374_v21  ;;  %v386_v45 = vpack.c.bf16 %v39_v41, %v38_v40  ;;  %v407_v46 = vpack.c.bf16 %v131_v44, %v130_v43  ;;  %v132_v48 = vld [vmem:[%s622_s3 + $0x70] sm:$0xff]  ;;  %v133_v49 = vld [vmem:[%s622_s3 + $0x78] sm:$0xff]  ;;  %v258_v51 = vld [vmem:[%s621_s2] ss:$0 sm:$0xff]  ;;  %s447_s2 = smov [#allocation2]  }
  0x11   :  { %376 = vmatprep.subr.bf16.mxu0 %v444_v3  ;;  %v410_v50 = vpack.c.bf16 %v133_v49, %v132_v48  ;;  %v259_v56 = vld [vmem:[%s623_s4] ss:$0 sm:$0xff]  ;;  %s246_s3 = sshll.u32 %s447_s2, 4  ;;  %s247_s3 = int_to_ptr.vmem [resolvable:$true] %s246_s3 }
  0x12   :  { %399 = vmatpush3.bf16.msra.mxu1 %v398_v30  ;;  %s420_s4 = scalar_lea.vmem %s247_s3, 128  ;;  %p425_p1 = scmp.lt.s32.totalorder %s247_s3, %s247_s3 }
  0x13   :  { %400 = vmatprep.subr.bf16.mxu1 %v444_v3  ;;  %p421_p0 = scmp.ne.s32.totalorder %s247_s3, %s420_s4  ;;  %p426_p2 = scmp.lt.s32.totalorder %s420_s4, %s420_s4 }
  0x14   :  { %378 = vmatpush3.bf16.msra.mxu0 %v377_v27 }
  0x15   :  { %379 = vmatprep.subr.bf16.mxu0 %v444_v3  ;;  %p427_p3 = por %p426_p2, %p425_p1 }
  0x16   :  { %402 = vmatpush3.bf16.msra.mxu1 %v401_v36 }
  0x17   :  { %403 = vmatprep.subr.bf16.mxu1 %v444_v3  ;;  %p428_p4 = pnand %p427_p3, %p421_p0 }
  0x18   :  { %381 = vmatpush3.bf16.msra.mxu0 %v380_v33 }
  0x19   :  { %382 = vmatprep.subr.bf16.mxu0 %v444_v3 }
  0x1a   :  { %405 = vmatpush3.bf16.msra.mxu1 %v404_v42 }
  0x1b   :  { %406 = vmatprep.subr.bf16.mxu1 %v444_v3 }
  0x1c   :  { %384 = vmatpush3.bf16.msra.mxu0 %v383_v39 }
  0x1d   :  { %385 = vmatprep.subr.bf16.mxu0 %v444_v3 }
  0x1e   :  { %408 = vmatpush3.bf16.msra.mxu1 %v407_v46 }
  0x1f   :  { %409 = vmatprep.subr.bf16.mxu1 %v444_v3 }
  0x20   :  { %387 = vmatpush3.bf16.msra.mxu0 %v386_v45 }
  0x22   :  { %411 = vmatpush3.bf16.msra.mxu1 %v410_v50 }
  0x23   :  { %327 = vmatmul.mubr.f32.vlgmr.msra.gmra.mrb[0].mxu0 %v23_v47 }
  0xf6   :  { %v113_v52 = vpop.f32.mrb[0].mxu0 }
  0xf7   :  { %v114_v53 = vadd.f32 %v258_v51, %v113_v52  ;;  %v328_v54 = vpop.f32.mrb[1].mxu0 }
  0xf9   :  { %v117_v55 = vmax.f32 %v114_v53, 0.0 }
  0xfb   :  { %362 = vmatmul.mubr.f32.vlgmr.msra.gmra.mrb[0].mxu1 %v117_v55 }
 0x1ce   :  { %v207_v57 = vpop.f32.mrb[0].mxu1 }
 0x1cf   :  { %v208_v58 = vadd.f32 %v259_v56, %v207_v57  ;;  %v363_v59 = vpop.f32.mrb[1].mxu1 }
 0x1d1   :  { %211 = vmax.xlane.f32.xlu0 %v208_v58 }
 0x25e   :  { %v212_v60 = vpop.xlane.xlu0 %211 }
 0x25f   :  { %v213_v61 = vsub.f32 %v208_v58, %v212_v60 }
 0x261   :  { %v214_v62 = vmul.f32 1.442695, %v213_v61 }
 0x263   :  { %416 = vpow2.f32 %v214_v62 }
 0x26d   :  { %v417_v63 = vpop.eup %416 }
 0x26e   :  { %216 = vadd.xlane.f32.xlu0 %v417_v63 }
 0x2fb   :  { %v217_v0 = vpop.xlane.xlu0 %216 }
 0x2fc   :  { %418 = vrcp.f32 %v217_v0 }
 0x306   :  { %v419_v1 = vpop.eup %418 }
 0x307   :  { %v219_v2 = vmul.f32 %v419_v1, %v217_v0 }
 0x309   :  { %v220_v3 = vsub.f32 2.0, %v219_v2 }
 0x30b   :  { %v221_v4 = vmul.f32 %v419_v1, %v220_v3 }
 0x30d   :  { %v222_v5 = vmul.f32 %v417_v63, %v221_v4 }
 0x30f   :  { %v233_v6 = vrot.slane %v222_v5, 4  ;;  %223 = vst [vmem:[#allocation2] sm:$0xff] %v222_v5 }
 0x310   :  { %431 = shalt.err (!%p428_p4)
}
 0x311   :  { %s432_s19 = scalar_lea.hbm %s624_s5, 128 }
 0x312   :  { %p433_p5 = scmp.ne.s32.totalorder %s624_s5, %s432_s19  ;;  %p436_p6 = scmp.lt.u32.totalorder %s432_s19, %s624_s5 }
 0x314   :  { %p438_p7 = pnand %p436_p6, %p433_p5 }
 0x316   :  { %441 = shalt.err (!%p438_p7)
}
 0x317   :  { %249 = dma.vmem_to_hbm [thread:$0]  %s247_s3, 128, %s624_s5, [#allocation3]   ;;  %v234_v7 = vadd.f32 %v233_v6, %v222_v5 }
 0x319   :  { %v235_v8 = vrot.slane %v234_v7, 2 }
 0x31b   :  { %v236_v9 = vadd.f32 %v235_v8, %v234_v7 }
 0x31d   :  { %v237_v10 = vrot.slane %v236_v9, 1 }
 0x31f   :  { %v238_v11 = vadd.f32 %v237_v10, %v236_v9 }
 0x321   :  { %239 = vst [vmem:[%s625_s6] sm:$0x1] %v238_v11 }
 0x322   :  { %442 = dma.done.wait [#allocation3], 128  }
 0x323   :  { %443 = vsyncadd [#allocation3], 4294967168 }
 0x324   :  { %257 = vsyncpa [#allocation3], 1 }

</bundles_post_ra>
